<compile_context>
chip_gen: v7x
topology: tpu7x:2x2x1
jax: 0.10.0
libtpu: 0.0.40
codegen_flags: <defaults>
</compile_context>

<pallas_src>
import jax
import jax.numpy as jnp
from jax.experimental import pallas as pl
from jax.experimental.pallas import tpu as pltpu


def anet_kernel(xT_ref, w1t_ref, b1_ref, w2t_ref, b2_ref, oT_ref):
    # xT:  (4, Bt)    batch on lanes
    # w1t: (64, 4)    b1: (64, 1)
    # w2t: (2, 64)    b2: (2, 1)
    # oT:  (2, Bt)
    h = jnp.dot(w1t_ref[...], xT_ref[...], preferred_element_type=jnp.float32)  # (64, Bt)
    h = jnp.maximum(h + b1_ref[...], 0.0)
    out = jnp.dot(w2t_ref[...], h, preferred_element_type=jnp.float32)          # (2, Bt)
    oT_ref[...] = (out + b2_ref[...]).astype(oT_ref.dtype)


def anet_forward(x, w1, b1, w2, b2, *, block_b=512):
    """x: (B, ...) float32 -> logits (B, 2) float32.

    Weights are stored as (in_features, out_features); biases as (1, out_features)
    (equivalent to PyTorch's x @ W.T + b with its (out, in) weight layout).
    """
    B = x.shape[0]
    x = x.reshape(B, -1)                      # mirror PyTorch's x.view(x.size(0), -1)
    in_dim = x.shape[1]
    hidden = w1.shape[1]
    out_dim = w2.shape[1]

    # Lane-dense layout: batch on the last (lane) axis.
    xT = x.T                                  # (in_dim, B)

    # Pick a 128-aligned batch tile and pad the batch up to a multiple of it.
    b_aligned = 128 * pl.cdiv(B, 128)
    block_b = min(block_b, b_aligned)
    B_pad = block_b * pl.cdiv(B, block_b)
    if B_pad != B:
        xT = jnp.pad(xT, ((0, 0), (0, B_pad - B)))

    # Transposed weights / column biases for the batch-on-lanes formulation.
    w1t = w1.T                                # (hidden, in_dim)
    b1c = b1.reshape(hidden, 1)               # (hidden, 1)
    w2t = w2.T                                # (out_dim, hidden)
    b2c = b2.reshape(out_dim, 1)              # (out_dim, 1)

    grid = (B_pad // block_b,)

    cost = pl.CostEstimate(
        flops=2 * B_pad * (in_dim * hidden + hidden * out_dim),
        transcendentals=0,
        bytes_accessed=4 * (in_dim * B_pad + out_dim * B_pad
                            + in_dim * hidden + hidden
                            + hidden * out_dim + out_dim),
    )

    # NOTE: if xprof ever shows exposed DMA between steps on v5e/v6e, add
    # pipeline_mode=pl.Buffered(3) to the x BlockSpec below.
    outT = pl.pallas_call(
        anet_kernel,
        out_shape=jax.ShapeDtypeStruct((out_dim, B_pad), jnp.float32),
        grid=grid,
        in_specs=[
            pl.BlockSpec((in_dim, block_b), lambda i: (0, i)),   # x tile (streamed)
            pl.BlockSpec((hidden, in_dim), lambda i: (0, 0)),    # W1^T (VMEM-resident)
            pl.BlockSpec((hidden, 1), lambda i: (0, 0)),         # b1
            pl.BlockSpec((out_dim, hidden), lambda i: (0, 0)),   # W2^T
            pl.BlockSpec((out_dim, 1), lambda i: (0, 0)),        # b2
        ],
        out_specs=pl.BlockSpec((out_dim, block_b), lambda i: (0, i)),
        compiler_params=pltpu.CompilerParams(
            dimension_semantics=("parallel",)),
        cost_estimate=cost,
    )(xT, w1t, b1c, w2t, b2c)

    return outT[:, :B].T                      # (B, out_dim)


def init_params(key, in_dim=4, hidden=64, out_dim=2):
    # Deterministic synthetic init (the PyTorch init loop is a no-op, so the
    # exact distribution is irrelevant; we use normal(std=0.01) / bias=0.1).
    k1, k2 = jax.random.split(key)
    w1 = (0.01 * jax.random.normal(k1, (in_dim, hidden))).astype(jnp.float32)
    b1 = jnp.full((1, hidden), 0.1, dtype=jnp.float32)
    w2 = (0.01 * jax.random.normal(k2, (hidden, out_dim))).astype(jnp.float32)
    b2 = jnp.full((1, out_dim), 0.1, dtype=jnp.float32)
    return w1, b1, w2, b2


if __name__ == "__main__":
    key = jax.random.PRNGKey(0)
    kx, kp = jax.random.split(key)

    # A stack of CartPole observations (obs dim = 4). Non-multiple of the tile
    # size on purpose, to exercise the padding / tail path.
    B = 1000
    x = jax.random.normal(kx, (B, 4), dtype=jnp.float32)
    w1, b1, w2, b2 = init_params(kp)

    out = anet_forward(x, w1, b1, w2, b2)
    out = jax.block_until_ready(out)

    # Sanity check against a plain JAX reference.
    ref = jnp.maximum(x @ w1 + b1, 0.0) @ w2 + b2
    assert out.shape == (B, 2)
    assert jnp.allclose(out, ref, atol=1e-5, rtol=1e-5)

    print("KERNEL_OK")
</pallas_src>

<mosaic_0001>
module attributes {stable_mosaic.version = 11 : i64} {
  func.func @anet_kernel(%arg0: i32, %arg1: memref<4x512xf32, #tpu.memory_space<vmem>>, %arg2: memref<64x4xf32, #tpu.memory_space<vmem>>, %arg3: memref<64x1xf32, #tpu.memory_space<vmem>>, %arg4: memref<2x64xf32, #tpu.memory_space<vmem>>, %arg5: memref<2x1xf32, #tpu.memory_space<vmem>>, %arg6: memref<2x512xf32, #tpu.memory_space<vmem>>) attributes {dimension_semantics = [#tpu.dimension_semantics<parallel>], iteration_bounds = array<i64: 2>, scalar_prefetch = 0 : i64, scratch_operands = 0 : i64, tpu.core_type = #tpu.core_type<tc>, window_params = [{transform_indices = @transform_0, window_bounds = array<i64: 4, 512>}, {pipeline_mode = #tpu.pipeline_mode<synchronous>, transform_indices = @transform_1, window_bounds = array<i64: 64, 4>}, {pipeline_mode = #tpu.pipeline_mode<synchronous>, transform_indices = @transform_2, window_bounds = array<i64: 64, 1>}, {pipeline_mode = #tpu.pipeline_mode<synchronous>, transform_indices = @transform_3, window_bounds = array<i64: 2, 64>}, {pipeline_mode = #tpu.pipeline_mode<synchronous>, transform_indices = @transform_4, window_bounds = array<i64: 2, 1>}, {transform_indices = @transform_5, window_bounds = array<i64: 2, 512>}]} {
    %c0 = arith.constant 0 : index
    %c0_0 = arith.constant 0 : index
    %0 = vector.load %arg2[%c0, %c0_0] : memref<64x4xf32, #tpu.memory_space<vmem>>, vector<64x4xf32>
    %c0_1 = arith.constant 0 : index
    %c0_2 = arith.constant 0 : index
    %1 = vector.load %arg1[%c0_1, %c0_2] : memref<4x512xf32, #tpu.memory_space<vmem>>, vector<4x512xf32>
    %cst = arith.constant dense<0.000000e+00> : vector<64x512xf32>
    %2 = tpu.matmul %0, %1, %cst {dimension_numbers = #tpu.dot_dimension_numbers<[1], [0], [0], [1], [0, 0, 1, 1], [], []>} : vector<64x4xf32>, vector<4x512xf32>, vector<64x512xf32> -> vector<64x512xf32>
    %c0_3 = arith.constant 0 : index
    %c0_4 = arith.constant 0 : index
    %3 = vector.load %arg3[%c0_3, %c0_4] : memref<64x1xf32, #tpu.memory_space<vmem>>, vector<64x1xf32>
    %4 = vector.broadcast %3 : vector<64x1xf32> to vector<64x512xf32>
    %5 = arith.addf %2, %4 : vector<64x512xf32>
    %cst_5 = arith.constant 0.000000e+00 : f32
    %6 = vector.broadcast %cst_5 : f32 to vector<64x512xf32>
    %7 = arith.maximumf %5, %6 : vector<64x512xf32>
    %c0_6 = arith.constant 0 : index
    %c0_7 = arith.constant 0 : index
    %8 = vector.load %arg4[%c0_6, %c0_7] : memref<2x64xf32, #tpu.memory_space<vmem>>, vector<2x64xf32>
    %cst_8 = arith.constant dense<0.000000e+00> : vector<2x512xf32>
    %9 = tpu.matmul %8, %7, %cst_8 {dimension_numbers = #tpu.dot_dimension_numbers<[1], [0], [0], [1], [0, 0, 1, 1], [], []>} : vector<2x64xf32>, vector<64x512xf32>, vector<2x512xf32> -> vector<2x512xf32>
    %c0_9 = arith.constant 0 : index
    %c0_10 = arith.constant 0 : index
    %10 = vector.load %arg5[%c0_9, %c0_10] : memref<2x1xf32, #tpu.memory_space<vmem>>, vector<2x1xf32>
    %11 = vector.broadcast %10 : vector<2x1xf32> to vector<2x512xf32>
    %12 = arith.addf %9, %11 : vector<2x512xf32>
    %c0_11 = arith.constant 0 : index
    %c0_12 = arith.constant 0 : index
    %13 = vector.load %arg6[%c0_11, %c0_12] : memref<2x512xf32, #tpu.memory_space<vmem>>, vector<2x512xf32>
    tpu.vector_store %arg6[%c0_11, %c0_12], %12 {strides = array<i32>} : memref<2x512xf32, #tpu.memory_space<vmem>>, vector<2x512xf32>,
    return
  }
  func.func @transform_0(%arg0: i32) -> (i32, i32) {
    %c0_i32 = arith.constant 0 : i32
    %c0_i32_0 = arith.constant 0 : i32
    return %c0_i32, %arg0 : i32, i32
  }
  func.func @transform_1(%arg0: i32) -> (i32, i32) {
    %c0_i32 = arith.constant 0 : i32
    %c0_i32_0 = arith.constant 0 : i32
    %c0_i32_1 = arith.constant 0 : i32
    return %c0_i32, %c0_i32_0 : i32, i32
  }
  func.func @transform_2(%arg0: i32) -> (i32, i32) {
    %c0_i32 = arith.constant 0 : i32
    %c0_i32_0 = arith.constant 0 : i32
    %c0_i32_1 = arith.constant 0 : i32
    return %c0_i32, %c0_i32_0 : i32, i32
  }
  func.func @transform_3(%arg0: i32) -> (i32, i32) {
    %c0_i32 = arith.constant 0 : i32
    %c0_i32_0 = arith.constant 0 : i32
    %c0_i32_1 = arith.constant 0 : i32
    return %c0_i32, %c0_i32_0 : i32, i32
  }
  func.func @transform_4(%arg0: i32) -> (i32, i32) {
    %c0_i32 = arith.constant 0 : i32
    %c0_i32_0 = arith.constant 0 : i32
    %c0_i32_1 = arith.constant 0 : i32
    return %c0_i32, %c0_i32_0 : i32, i32
  }
  func.func @transform_5(%arg0: i32) -> (i32, i32) {
    %c0_i32 = arith.constant 0 : i32
    %c0_i32_0 = arith.constant 0 : i32
    return %c0_i32, %arg0 : i32, i32
  }
}

</mosaic_0001>

<bundles_post_ra>
// kernel: tpu_custom_call.1
= control target key start
LH: loop header
LB: loop body
LE: loop exit
PB: predicated region body
PF: predicated region fallthrough
CT: control target
= control target key end

     0   :  { %10 = vsyncpa [#allocation3], 0  ;;  %s1228_s0 = inlined_call_operand.vmem [shape: f32[4,1024], index: 0, kind: input, shape index: {}]   ;;  %s1229_s1 = inlined_call_operand.vmem [shape: f32[64,4], index: 1, kind: input, shape index: {}]   ;;  %s1230_s2 = inlined_call_operand.vmem [shape: f32[64,1], index: 2, kind: input, shape index: {}]   ;;  %s1231_s3 = inlined_call_operand.vmem [shape: f32[2,64], index: 3, kind: input, shape index: {}]   ;;  %s1232_s4 = inlined_call_operand.vmem [shape: f32[2,1], index: 4, kind: input, shape index: {}]   ;;  %s1233_s5 = inlined_call_operand.hbm [shape: f32[2,1024], index: 5, kind: output, shape index: {}]  }
   0x1   :  { %12 = vsyncpa [#allocation3 + $0x1], 0  ;;  %s1041_s18 = smov 0   ;;  %s1043_s19 = smov 0  }
   0x2   :  { %s1045_s20 = smov 0   ;;  %s1047_s21 = smov 0  }
   0x3 LB: > { %s1062_s22 = sadd.s32 4294967295, %s1005_s21   ;;  %s830_s23 = sadd.s32 4294967294, %s1005_s21   ;;  %s1005_s21 = sphi %s1047_s21, %s1239_s21   ;;  %s1001_s20 = sphi %s1045_s20, %s1238_s20   ;;  %s997_s19 = sphi %s1043_s19, %s1237_s19   ;;  %s993_s18 = sphi %s1041_s18, %s1236_s18  }
   0x4   : > { %s1066_s24 = sadd.s32 1, %s1005_s21   ;;  %s135_s25 = sadd.s32 1, %s1001_s20 }
   0x5   : > { %s132_s26 = ssub.s32 %s1005_s21, %s1066_s24  ;;  %p145_p0 = scmp.ne.s32.totalorder %s1001_s20, %s997_s19 }
   0x6   : > { %p133_p1 = scmp.eq.s32.totalorder %s132_s26, 0  ;;  %p146_p2 = scmp.eq.s32.totalorder %s1062_s22, 1 }
   0x7   : > { %p151_p3 = scmp.ne.s32.totalorder %s997_s19, %s993_s18  ;;  %p152_p4 = scmp.eq.s32.totalorder %s830_s23, 1 }
   0x8   : > { %s1077_s27 = scalar_select %p133_p1, %s1001_s20, %s135_s25  }
   0x9   : > { %p1079_p5 = por %p146_p2, %p145_p0  ;;  %p1083_p6 = por %p152_p4, %p151_p3 }
   0xa   : > { %p833_p7 = scmp.ge.s32.totalorder %s1005_s21, 1  ;;  %p191_p8 = scmp.lt.s32.totalorder %s1005_s21, 3 }
   0xc   : > { %p192_p9 = pnand %p833_p7, %p191_p8 }
   0xd   : > { %s835_s30 = sshll.u32 (!%p192_p9), %s1062_s22, 2  ;;  %v1007_v0 = vmov (!%p192_p9), 0.0   ;;  %v1008_v1 = vmov (!%p192_p9), 0   ;;  %v236_v2 = vld [vmem:[%s1230_s2] sm:$0xff] (!%p192_p9)  ;;  %v238_v3 = vld [vmem:[%s1230_s2 + $0x10] sm:$0xff] (!%p192_p9)  ;;  %v237_v4 = vld [vmem:[%s1230_s2 + $0x8] sm:$0xff] (!%p192_p9) }
   0xe   : > { %195 = sbr.rel (%p192_p9) target bundleno = 515 (0x203), region = 40  ;;  %p220_p10 = scmp.lt.s32.totalorder (!%p192_p9), %s835_s30, 7  ;;  %386 = vmatprep.mubr.f32.mxu0 (!%p192_p9), %v1007_v0  ;;  %499 = vmatprep.mubr.f32.mxu1 (!%p192_p9), %v1007_v0  ;;  %v239_v5 = vld [vmem:[%s1230_s2 + $0x18] sm:$0xff] (!%p192_p9)  ;;  %vm313_vm0 = vcmask (!%p192_p9), 1043456   ;;  %v226_v10 = vld [vmem:[%s1229_s1] sm:$0xff] (!%p192_p9)  ;;  %vm288_vm1 = vcmask (!%p192_p9), 31744  }
   0xf   : > { %939 = vset.pattern.permute.xlu0 (!%p192_p9), %v1008_v1  ;;  %940 = vset.pattern.permute.xlu1 (!%p192_p9), %v1008_v1  ;;  %v240_v11 = vld [vmem:[%s1230_s2 + $0x20] sm:$0xff] (!%p192_p9)  ;;  %v241_v12 = vld [vmem:[%s1230_s2 + $0x28] sm:$0xff] (!%p192_p9)  ;;  %v242_v14 = vld [vmem:[%s1230_s2 + $0x30] sm:$0xff] (!%p192_p9)  ;;  %vm587_vm2 = vcmask (!%p192_p9), 523264   ;;  %s216_s14 = sand.u32 (!%p192_p9), 1, %s997_s19   ;;  %s864_s16 = sshll.u32 (!%p192_p9), %s1062_s22, 7 }
  0x10   : > { %246 = vperm.xlu0 (!%p192_p9), %939, %v236_v2   ;;  %256 = vperm.xlu1 (!%p192_p9), %940, %v238_v3   ;;  %v227_v13 = vld [vmem:[%s1229_s1 + $0x8] sm:$0xff] (!%p192_p9)  ;;  %v243_v15 = vld [vmem:[%s1230_s2 + $0x38] sm:$0xff] (!%p192_p9)  ;;  %v228_v16 = vld [vmem:[%s1229_s1 + $0x10] sm:$0xff] (!%p192_p9)  ;;  %s757_s6 = scalar_lea.sflag (!%p192_p9), [#allocation3], %s216_s14  ;;  %s1010_s22 = smov (!%p192_p9), [#allocation2]  }
  0x11   : > { %v581_v17 = vld [vmem:[%s1232_s4] sm:$0x3] (!%p192_p9)  ;;  %v229_v18 = vld [vmem:[%s1229_s1 + $0x18] sm:$0xff] (!%p192_p9)  ;;  %v231_v20 = vld [vmem:[%s1229_s1 + $0x28] sm:$0xff] (!%p192_p9)  ;;  %s947_s8 = sshll.u32 (!%p192_p9), %s1010_s22, 4  ;;  %s948_s8 = int_to_ptr.vmem [resolvable:$false] %s947_s8 }
  0x12   : > { %v230_v19 = vld [vmem:[%s1229_s1 + $0x20] sm:$0xff] (!%p192_p9)  ;;  %v232_v21 = vld [vmem:[%s1229_s1 + $0x30] sm:$0xff] (!%p192_p9)  ;;  %v233_v22 = vld [vmem:[%s1229_s1 + $0x38] sm:$0xff] (!%p192_p9)  ;;  %s949_s9 = scalar_lea.vmem (!%p192_p9), %s948_s8, 256 }
  0x14   : > { %251 = vperm.xlu0 (!%p192_p9), %939, %v237_v4   ;;  %261 = vperm.xlu1 (!%p192_p9), %940, %v239_v5  }
  0x15   : > { %s1241_s30 = smov (!%p220_p10, %s835_s30), 7 }
  0x16   : > { %s836_s10 = sshll.u32 %s1241_s30, 2  ;;  %s1186_s30 = scalar_lea.hbm %s1233_s5, %s864_s16 }
  0x17   : > { %s223_s15 = scalar_lea.vmem %s1228_s0, %s836_s10 }
  0x18   : > { %v234_v6 = vld [vmem:[%s223_s15] sm:$0xff]  ;;  %v235_v7 = vld [vmem:[%s223_s15 + $0x8] sm:$0xff]  ;;  %266 = vperm.xlu0 %939, %v240_v11   ;;  %271 = vperm.xlu1 %940, %v241_v12   ;;  %s834_s15 = sshll.u32 %s216_s14, 3 }
  0x19   : > { %v286_v8 = vcombine.high %v234_v6, %v234_v6  ;;  %v287_v9 = vcombine.high %v235_v7, %v235_v7  ;;  %s218_s17 = scalar_lea.vmem [#allocation2], %s834_s15 }
  0x1a   : > { %s771_s23 = sshll.u32 %s218_s17, 4  ;;  %s1188_s23 = int_to_ptr.vmem [resolvable:$true] %s771_s23 }
  0x1b   : > { %837 = vmatprep.subr.msk.mxu0 %vm313_vm0, %v286_v8  ;;  %847 = vmatprep.subr.msk.mxu1 %vm313_vm0, %v287_v9  ;;  %s943_s7 = scalar_lea.vmem %s1188_s23, 128  ;;  %p950_p0 = scmp.lt.s32.totalorder %s1188_s23, %s948_s8 }
  0x1c   : > { %838 = vmatpush1.msk.msra.mxu0 %vm313_vm0, %v234_v6  ;;  %848 = vmatpush1.msk.msra.mxu1 %vm313_vm0, %v235_v7  ;;  %p944_p11 = scmp.ne.s32.totalorder %s1188_s23, %s943_s7  ;;  %p951_p1 = scmp.lt.s32.totalorder %s949_s9, %s943_s7 }
  0x1d   : > { %839 = vmatmul.mubr.msk.f32.vlgmr.msra.gmra.mrb[0].mxu0 %vm288_vm1, %v226_v10  ;;  %849 = vmatmul.mubr.msk.f32.vlgmr.msra.gmra.mrb[0].mxu1 %vm288_vm1, %v226_v10 }
  0x1e   : > { %392 = vmatprep.mubr.f32.mxu0 %v1007_v0  ;;  %505 = vmatprep.mubr.f32.mxu1 %v1007_v0  ;;  %p945_p12 = pnand %p944_p11, %p1079_p5  ;;  %p952_p2 = por %p951_p1, %p950_p0 }
  0x1f   : > { %276 = vperm.xlu0 %939, %v242_v14   ;;  %281 = vperm.xlu1 %940, %v243_v15  }
  0x20   : > { %p946_p13 = pneg %p945_p12 }
  0x21   : > { %840 = vmatmul.mubr.msk.f32.gmra.mrb[2].mxu0 %vm288_vm1, %v227_v13  ;;  %850 = vmatmul.mubr.msk.f32.gmra.mrb[2].mxu1 %vm288_vm1, %v227_v13 }
  0x22   : > { %398 = vmatprep.mubr.f32.mxu0 %v1007_v0  ;;  %511 = vmatprep.mubr.f32.mxu1 %v1007_v0  ;;  %p953_p3 = pnand %p952_p2, %p946_p13 }
  0x23   : > { %584 = vperm.xlu0 %939, %v581_v17  }
  0x25   : > { %841 = vmatmul.mubr.msk.f32.gmra.mrb[4].mxu0 %vm288_vm1, %v228_v16  ;;  %851 = vmatmul.mubr.msk.f32.gmra.mrb[4].mxu1 %vm288_vm1, %v228_v16 }
  0x26   : > { %404 = vmatprep.mubr.f32.mxu0 %v1007_v0  ;;  %517 = vmatprep.mubr.f32.mxu1 %v1007_v0 }
  0x29   : > { %842 = vmatmul.mubr.msk.f32.gmra.mrb[6].mxu0 %vm288_vm1, %v229_v18  ;;  %852 = vmatmul.mubr.msk.f32.gmra.mrb[6].mxu1 %vm288_vm1, %v229_v18 }
  0x2a   : > { %410 = vmatprep.mubr.f32.mxu0 %v1007_v0  ;;  %523 = vmatprep.mubr.f32.mxu1 %v1007_v0 }
  0x2d   : > { %843 = vmatmul.mubr.msk.f32.gmra.mrb[8].mxu0 %vm288_vm1, %v230_v19  ;;  %853 = vmatmul.mubr.msk.f32.gmra.mrb[8].mxu1 %vm288_vm1, %v230_v19 }
  0x2e   : > { %416 = vmatprep.mubr.f32.mxu0 %v1007_v0  ;;  %529 = vmatprep.mubr.f32.mxu1 %v1007_v0 }
  0x31   : > { %844 = vmatmul.mubr.msk.f32.gmra.mrb[10].mxu0 %vm288_vm1, %v231_v20  ;;  %854 = vmatmul.mubr.msk.f32.gmra.mrb[10].mxu1 %vm288_vm1, %v231_v20 }
  0x32   : > { %422 = vmatprep.mubr.f32.mxu0 %v1007_v0  ;;  %535 = vmatprep.mubr.f32.mxu1 %v1007_v0 }
  0x35   : > { %845 = vmatmul.mubr.msk.f32.gmra.mrb[12].mxu0 %vm288_vm1, %v232_v21  ;;  %855 = vmatmul.mubr.msk.f32.gmra.mrb[12].mxu1 %vm288_vm1, %v232_v21 }
  0x36   : > { %428 = vmatprep.mubr.f32.mxu0 %v1007_v0  ;;  %541 = vmatprep.mubr.f32.mxu1 %v1007_v0 }
  0x39   : > { %846 = vmatmul.mubr.msk.f32.gmra.mrb[14].mxu0 %vm288_vm1, %v233_v22  ;;  %856 = vmatmul.mubr.msk.f32.gmra.mrb[14].mxu1 %vm288_vm1, %v233_v22 }
  0x3a   : > { %655 = vmatprep.mubr.f32.mxu0 %v1007_v0  ;;  %726 = vmatprep.mubr.f32.mxu1 %v1007_v0 }
  0x8f   : > { %v247_v23 = vpop.permute.xlu0 %246  ;;  %v257_v29 = vpop.permute.xlu1 %256 }
  0x93   : > { %v252_v28 = vpop.permute.xlu0 %251  ;;  %v262_v58 = vpop.permute.xlu1 %261 }
  0x97   : > { %v267_v21 = vpop.permute.xlu0 %266 }
  0xf0   : > { %v388_v24 = vpop.f32.mrb[0].mxu0  ;;  %v501_v25 = vpop.f32.mrb[0].mxu1 }
  0xf1   : > { %v390_v26 = vpop.f32.mrb[1].mxu0  ;;  %v503_v27 = vpop.f32.mrb[1].mxu1  ;;  %v389_v30 = vadd.f32 %v388_v24, %v247_v23  ;;  %v502_v31 = vadd.f32 %v501_v25, %v247_v23 }
  0xf2   : > { %v391_v32 = vadd.f32 %v390_v26, %v247_v23  ;;  %v504_v33 = vadd.f32 %v503_v27, %v247_v23  ;;  %v272_v24 = vpop.permute.xlu1 %271 }
  0xf3   : > { %v548_v42 = vmax.f32 %v389_v30, 0.0  ;;  %v550_v43 = vmax.f32 %v502_v31, 0.0 }
  0xf4   : > { %v394_v34 = vpop.f32.mrb[2].mxu0  ;;  %v507_v35 = vpop.f32.mrb[2].mxu1  ;;  %v549_v46 = vmax.f32 %v391_v32, 0.0  ;;  %v551_v47 = vmax.f32 %v504_v33, 0.0 }
  0xf5   : > { %v395_v36 = vadd.f32 %v394_v34, %v252_v28  ;;  %v508_v37 = vadd.f32 %v507_v35, %v252_v28  ;;  %v396_v38 = vpop.f32.mrb[3].mxu0  ;;  %v509_v39 = vpop.f32.mrb[3].mxu1 }
  0xf6   : > { %v397_v40 = vadd.f32 %v396_v38, %v252_v28  ;;  %v510_v41 = vadd.f32 %v509_v39, %v252_v28 }
  0xf7   : > { %v552_v44 = vmax.f32 %v395_v36, 0.0  ;;  %v554_v45 = vmax.f32 %v508_v37, 0.0 }
  0xf8   : > { %v553_v48 = vmax.f32 %v397_v40, 0.0  ;;  %v555_v49 = vmax.f32 %v510_v41, 0.0  ;;  %v400_v50 = vpop.f32.mrb[4].mxu0  ;;  %v513_v51 = vpop.f32.mrb[4].mxu1 }
  0xf9   : > { %v867_v52 = vpack.c.bf16 %v552_v44, %v548_v42  ;;  %v883_v53 = vpack.c.bf16 %v554_v45, %v550_v43  ;;  %v402_v54 = vpop.f32.mrb[5].mxu0  ;;  %v515_v55 = vpop.f32.mrb[5].mxu1  ;;  %v401_v59 = vadd.f32 %v400_v50, %v257_v29  ;;  %v514_v60 = vadd.f32 %v513_v51, %v257_v29 }
  0xfa   : > { %v865_v56 = vpack.c.bf16 %v553_v48, %v549_v46  ;;  %v881_v57 = vpack.c.bf16 %v555_v49, %v551_v47  ;;  %v403_v61 = vadd.f32 %v402_v54, %v257_v29  ;;  %v516_v62 = vadd.f32 %v515_v55, %v257_v29  ;;  %v277_v51 = vpop.permute.xlu0 %276  ;;  %v282_v54 = vpop.permute.xlu1 %281 }
  0xfb   : > { %v556_v7 = vmax.f32 %v401_v59, 0.0  ;;  %v558_v8 = vmax.f32 %v514_v60, 0.0 }
  0xfc   : > { %v406_v63 = vpop.f32.mrb[6].mxu0  ;;  %v519_v0 = vpop.f32.mrb[6].mxu1  ;;  %866 = vmatprep.subr.bf16.mxu0 %v865_v56  ;;  %882 = vmatprep.subr.bf16.mxu1 %v881_v57  ;;  %v557_v11 = vmax.f32 %v403_v61, 0.0  ;;  %v559_v12 = vmax.f32 %v516_v62, 0.0 }
  0xfd   : > { %v407_v1 = vadd.f32 %v406_v63, %v262_v58  ;;  %v520_v2 = vadd.f32 %v519_v0, %v262_v58  ;;  %v408_v3 = vpop.f32.mrb[7].mxu0  ;;  %v521_v4 = vpop.f32.mrb[7].mxu1  ;;  %868 = vmatpush1.bf16.msra.mxu0 %v867_v52  ;;  %884 = vmatpush1.bf16.msra.mxu1 %v883_v53 }
  0xfe   : > { %v409_v5 = vadd.f32 %v408_v3, %v262_v58  ;;  %v522_v6 = vadd.f32 %v521_v4, %v262_v58 }
  0xff   : > { %v560_v9 = vmax.f32 %v407_v1, 0.0  ;;  %v562_v10 = vmax.f32 %v520_v2, 0.0 }
 0x100   : > { %v561_v13 = vmax.f32 %v409_v5, 0.0  ;;  %v563_v14 = vmax.f32 %v522_v6, 0.0  ;;  %v412_v15 = vpop.f32.mrb[8].mxu0  ;;  %v525_v16 = vpop.f32.mrb[8].mxu1 }
 0x101   : > { %v871_v17 = vpack.c.bf16 %v560_v9, %v556_v7  ;;  %v887_v18 = vpack.c.bf16 %v562_v10, %v558_v8  ;;  %v414_v19 = vpop.f32.mrb[9].mxu0  ;;  %v527_v20 = vpop.f32.mrb[9].mxu1  ;;  %v413_v25 = vadd.f32 %v412_v15, %v267_v21  ;;  %v526_v26 = vadd.f32 %v525_v16, %v267_v21  ;;  %v580_v15 = vld [vmem:[%s1231_s3] sm:$0x3] }
 0x102   : > { %v869_v22 = vpack.c.bf16 %v561_v13, %v557_v11  ;;  %v885_v23 = vpack.c.bf16 %v563_v14, %v559_v12  ;;  %v415_v27 = vadd.f32 %v414_v19, %v267_v21  ;;  %v528_v28 = vadd.f32 %v527_v20, %v267_v21  ;;  %v585_v21 = vpop.permute.xlu0 %584 }
 0x103   : > { %v564_v37 = vmax.f32 %v413_v25, 0.0  ;;  %v566_v38 = vmax.f32 %v526_v26, 0.0  ;;  %v1009_v16 = vmov 1983009808  }
 0x104   : > { %v418_v29 = vpop.f32.mrb[10].mxu0  ;;  %v531_v30 = vpop.f32.mrb[10].mxu1  ;;  %870 = vmatprep.subr.bf16.mxu0 %v869_v22  ;;  %886 = vmatprep.subr.bf16.mxu1 %v885_v23  ;;  %v565_v41 = vmax.f32 %v415_v27, 0.0  ;;  %v567_v42 = vmax.f32 %v528_v28, 0.0 }
 0x105   : > { %v419_v31 = vadd.f32 %v418_v29, %v272_v24  ;;  %v532_v32 = vadd.f32 %v531_v30, %v272_v24  ;;  %v420_v33 = vpop.f32.mrb[11].mxu0  ;;  %v533_v34 = vpop.f32.mrb[11].mxu1  ;;  %872 = vmatpush1.bf16.msra.mxu0 %v871_v17  ;;  %888 = vmatpush1.bf16.msra.mxu1 %v887_v18  ;;  %v740_v17 = vunpack.c.l.s4 %v1009_v16  ;;  %v742_v18 = vlaneseq }
 0x106   : > { %v421_v35 = vadd.f32 %v420_v33, %v272_v24  ;;  %v534_v36 = vadd.f32 %v533_v34, %v272_v24 }
 0x107   : > { %v568_v39 = vmax.f32 %v419_v31, 0.0  ;;  %v570_v40 = vmax.f32 %v532_v32, 0.0  ;;  %v741_v19 = vunpack.c.0.s8 %v740_v17  ;;  %v743_v20 = vshrl.u32 %v742_v18, 7 }
 0x108   : > { %v569_v43 = vmax.f32 %v421_v35, 0.0  ;;  %v571_v44 = vmax.f32 %v534_v36, 0.0  ;;  %v424_v45 = vpop.f32.mrb[12].mxu0  ;;  %v537_v46 = vpop.f32.mrb[12].mxu1 }
 0x109   : > { %v875_v47 = vpack.c.bf16 %v568_v39, %v564_v37  ;;  %v891_v48 = vpack.c.bf16 %v570_v40, %v566_v38  ;;  %v426_v49 = vpop.f32.mrb[13].mxu0  ;;  %v539_v50 = vpop.f32.mrb[13].mxu1  ;;  %v425_v55 = vadd.f32 %v424_v45, %v277_v51  ;;  %v538_v56 = vadd.f32 %v537_v46, %v277_v51 }
 0x10a   : > { %v873_v52 = vpack.c.bf16 %v569_v43, %v565_v41  ;;  %v889_v53 = vpack.c.bf16 %v571_v44, %v567_v42  ;;  %v427_v57 = vadd.f32 %v426_v49, %v277_v51  ;;  %v540_v58 = vadd.f32 %v539_v50, %v277_v51 }
 0x10b   : > { %v572_v3 = vmax.f32 %v425_v55, 0.0  ;;  %v574_v4 = vmax.f32 %v538_v56, 0.0  ;;  %v744_v29 = vsub.s32 %v741_v19, %v743_v20 }
 0x10c   : > { %v430_v59 = vpop.f32.mrb[14].mxu0  ;;  %v543_v60 = vpop.f32.mrb[14].mxu1  ;;  %874 = vmatprep.subr.bf16.mxu0 %v873_v52  ;;  %890 = vmatprep.subr.bf16.mxu1 %v889_v53  ;;  %v573_v7 = vmax.f32 %v427_v57, 0.0  ;;  %v575_v8 = vmax.f32 %v540_v58, 0.0 }
 0x10d   : > { %v431_v61 = vadd.f32 %v430_v59, %v282_v54  ;;  %v544_v62 = vadd.f32 %v543_v60, %v282_v54  ;;  %v432_v63 = vpop.f32.mrb[15].mxu0  ;;  %v545_v0 = vpop.f32.mrb[15].mxu1  ;;  %876 = vmatpush1.bf16.msra.mxu0 %v875_v47  ;;  %892 = vmatpush1.bf16.msra.mxu1 %v891_v48 }
 0x10e   : > { %v433_v1 = vadd.f32 %v432_v63, %v282_v54  ;;  %v546_v2 = vadd.f32 %v545_v0, %v282_v54 }
 0x10f   : > { %v576_v5 = vmax.f32 %v431_v61, 0.0  ;;  %v578_v6 = vmax.f32 %v544_v62, 0.0 }
 0x110   : > { %v577_v9 = vmax.f32 %v433_v1, 0.0  ;;  %v579_v10 = vmax.f32 %v546_v2, 0.0 }
 0x111   : > { %v879_v11 = vpack.c.bf16 %v576_v5, %v572_v3  ;;  %v895_v12 = vpack.c.bf16 %v578_v6, %v574_v4 }
 0x112   : > { %v877_v13 = vpack.c.bf16 %v577_v9, %v573_v7  ;;  %v893_v14 = vpack.c.bf16 %v579_v10, %v575_v8 }
 0x114   : > { %878 = vmatprep.subr.bf16.mxu0 %v877_v13  ;;  %894 = vmatprep.subr.bf16.mxu1 %v893_v14 }
 0x115   : > { %880 = vmatpush1.bf16.msra.mxu0 %v879_v11  ;;  %896 = vmatpush1.bf16.msra.mxu1 %v895_v12 }
 0x118   : > { %857 = vmatmul.mubr.msk.f32.vlgmr.msra.gmra.mrb[16].mxu0 %vm587_vm2, %v580_v15  ;;  %858 = vmatmul.mubr.msk.f32.vlgmr.msra.gmra.mrb[16].mxu1 %vm587_vm2, %v580_v15 }
 0x1eb   : > { %v657_v22 = vpop.f32.mrb[16].mxu0  ;;  %v728_v23 = vpop.f32.mrb[16].mxu1 }
 0x1ec   : > { %v658_v24 = vadd.f32 %v657_v22, %v585_v21  ;;  %v729_v25 = vadd.f32 %v728_v23, %v585_v21  ;;  %v659_v26 = vpop.f32.mrb[17].mxu0  ;;  %v730_v27 = vpop.f32.mrb[17].mxu1 }
 0x1ed   : > { %v660_v28 = vadd.f32 %v659_v26, %v585_v21  ;;  %v731_v30 = vadd.f32 %v730_v27, %v585_v21 }
 0x1ef   : > { %v737_v31 = vcombine.low %v658_v24, %v660_v28  ;;  %v738_v32 = vcombine.low %v729_v25, %v731_v30 }
 0x1f1   : > { %v745_v33 = vrot.slane %v737_v31, %v744_v29  ;;  %v752_v34 = vrot.slane %v738_v32, %v744_v29 }
 0x1f3   : > { %v753_v35 = vcombine.low %v745_v33, %v752_v34 }
 0x1f5   : > { %755 = vst [vmem:[%s218_s17] sm:$0xff] %v753_v35 }
 0x1f6   : > { %956 = shalt.err (!%p953_p3)
}
 0x1f7   : > { %s957_s10 = scalar_lea.hbm %s1186_s30, 128  ;;  %s961_s13 = scalar_lea.hbm %s1233_s5, 256 }
 0x1f8   : > { %p958_p4 = scmp.ne.s32.totalorder %s1186_s30, %s957_s10  ;;  %p962_p9 = scmp.lt.u32.totalorder %s1186_s30, %s1233_s5 }
 0x1f9   : > { %p963_p10 = scmp.lt.u32.totalorder %s961_s13, %s957_s10  ;;  %p965_p12 = scmp.lt.u32.totalorder %s957_s10, %s1186_s30 }
 0x1fa   : > { %p959_p7 = pnand %p958_p4, %p1079_p5 }
 0x1fb   : > { %p964_p11 = por %p963_p10, %p962_p9 }
 0x1fc   : > { %p960_p8 = pneg %p959_p7 }
 0x1fd   : > { %p966_p13 = por %p965_p12, %p964_p11 }
 0x1ff   : > { %p967_p0 = pnand %p966_p13, %p960_p8 }
 0x201   : > { %970 = shalt.err (!%p967_p0)
}
 0x202   : > { %897 = dma.vmem_to_hbm [thread:$0]  (%p1079_p5), %s1188_s23, 128, %s1186_s30, %s757_s6  }
 0x203 PF: > { %p903_p1 = scmp.ge.s32.totalorder %s1005_s21, 2  ;;  %s783_s16 = sand.u32 1, %s993_s18  }
 0x204   : > { %s784_s17 = scalar_lea.sflag [#allocation3], %s783_s16 }
 0x205   : > { %p900_p2 = pnand %p903_p1, %p1083_p6 }
 0x207   : > { %988 = dma.done.wait (!%p900_p2), %s784_s17, 128  }
 0x208   : > { %990 = vsyncadd (!%p900_p2), %s784_s17, 4294967168  ;;  %p15_p3 = scmp.ge.s32.totalorder %s1066_s24, 4   ;;  %s1236_s18 = smov %s997_s19 }
 0x209   : > { %s1237_s19 = smov %s1001_s20  ;;  %s1238_s20 = smov %s1077_s27 }
 0x20a   : > { %s1239_s21 = smov %s1066_s24  ;;  %17 = sbr.rel (!%p15_p3) target bundleno = 3 (0x3), region = 75 }
 0x211   :  { %789 = vsyncpa [#allocation3], 1 }
 0x212   :  { %791 = vsyncpa [#allocation3 + $0x1], 1 }

</bundles_post_ra>
